<compile_context>
chip_gen: v7x
topology: tpu7x:2x2x1
jax: 0.10.0
libtpu: 0.0.40
codegen_flags: <defaults>
</compile_context>

<pallas_src>
import functools

import jax
import jax.numpy as jnp
from jax import lax
from jax.experimental import pallas as pl
from jax.experimental.pallas import tpu as pltpu


def _round_up(x, m):
    return ((x + m - 1) // m) * m


def _dense_kernel(x_ref, w_ref, b_ref, o_ref, *scratch, k_rem):
    """One (tm, tn) output tile; K reduction along grid axis 2.

    x_ref: [tm, tk]   activation tile
    w_ref: [tn, tk]   weight tile in PyTorch [N, K] layout
    b_ref: [1, tn]    bias tile (resident across k; folded into acc init)
    o_ref: [tm, tn]   output tile (f32 outputs: doubles as the accumulator)
    scratch: optional [tm, tn] f32 accumulator (non-f32 outputs only)
    k_rem: static K % tk (0 -> no K-edge masking needed)
    """
    direct = len(scratch) == 0           # accumulate straight into o_ref
    acc_ref = o_ref if direct else scratch[0]
    k = pl.program_id(2)
    nk = pl.num_programs(2)

    @pl.when(k == 0)
    def _():
        # Bias folded into the accumulator init -> no per-K-step VALU add.
        acc_ref[...] = jnp.broadcast_to(
            b_ref[...].astype(acc_ref.dtype), acc_ref.shape
        )

    x = x_ref[...]
    w = w_ref[...]
    if k_rem:
        # K not a multiple of tk: the last K tile reads OOB garbage along the
        # lane axis.  Zero those columns in BOTH operands (selects, not
        # multiplies, so stray NaN/Inf cannot leak into in-bounds outputs).
        valid = jnp.where(k == nk - 1, k_rem, x.shape[1])
        x = jnp.where(lax.broadcasted_iota(jnp.int32, x.shape, 1) < valid,
                      x, jnp.zeros_like(x))
        w = jnp.where(lax.broadcasted_iota(jnp.int32, w.shape, 1) < valid,
                      w, jnp.zeros_like(w))

    # x @ W.T without materializing a transpose: contract dim 1 of both.
    acc_ref[...] += lax.dot_general(
        x, w,
        dimension_numbers=(((1,), (1,)), ((), ())),
        preferred_element_type=jnp.float32,
    ).astype(acc_ref.dtype)

    if not direct:
        @pl.when(k == nk - 1)
        def _():
            o_ref[...] = acc_ref[...].astype(o_ref.dtype)


@functools.partial(
    jax.jit,
    static_argnames=("tm", "tn", "tk", "compute_dtype", "vmem_limit"))
def _dense_pallas(x, weight, bias, *, tm, tn, tk, compute_dtype, vmem_limit):
    B, K = x.shape
    N = weight.shape[0]
    out_dtype = x.dtype

    # bf16 operand path (MXU-native, halves the W HBM stream); f32 accumulate.
    if compute_dtype is not None and jnp.dtype(compute_dtype) != x.dtype:
        x = x.astype(compute_dtype)
        weight = weight.astype(compute_dtype)
    bias2d = bias.reshape(1, N).astype(jnp.float32)

    grid = (pl.cdiv(B, tm), pl.cdiv(N, tn), pl.cdiv(K, tk))
    k_rem = K % tk

    # f32 outputs: accumulate directly into the resident output block and skip
    # the scratch (saves tm*tn*4 B of VMEM and the final copy).
    direct = jnp.dtype(out_dtype) == jnp.dtype(jnp.float32)
    scratch_shapes = [] if direct else [pltpu.VMEM((tm, tn), jnp.float32)]

    cost = pl.CostEstimate(
        flops=2 * B * N * K,
        transcendentals=0,
        bytes_accessed=(x.size * x.dtype.itemsize
                        + grid[0] * weight.size * weight.dtype.itemsize
                        + B * N * jnp.dtype(out_dtype).itemsize
                        + bias2d.size * 4),
    )

    return pl.pallas_call(
        functools.partial(_dense_kernel, k_rem=k_rem),
        out_shape=jax.ShapeDtypeStruct((B, N), out_dtype),
        grid_spec=pltpu.PrefetchScalarGridSpec(
            num_scalar_prefetch=0,
            grid=grid,
            in_specs=[
                pl.BlockSpec((tm, tk), lambda i, j, k: (i, k)),   # x tile
                pl.BlockSpec((tn, tk), lambda i, j, k: (j, k)),   # W tile [N,K]
                pl.BlockSpec((1, tn), lambda i, j, k: (0, j)),    # bias tile
            ],
            out_specs=pl.BlockSpec((tm, tn), lambda i, j, k: (i, j)),
            scratch_shapes=scratch_shapes,
        ),
        compiler_params=pltpu.CompilerParams(
            dimension_semantics=("parallel", "parallel", "arbitrary"),
            vmem_limit_bytes=vmem_limit,
        ),
        cost_estimate=cost,
    )(x, weight, bias2d)


_FALLBACK_VMEM_CAP = 64 * 1024 * 1024  # conservative: v7x per-TC VMEM


def _vmem_budget_bytes():
    try:
        cap = int(pltpu.get_tpu_info().vmem_capacity_bytes)
    except Exception:
        cap = _FALLBACK_VMEM_CAP
    # Keep the double-buffered footprint well under physical VMEM
    # (v7x: 64 MiB -> 48 MiB budget; v5e/v6e: 128 MiB -> 96 MiB budget).
    return min((cap * 3) // 4, 96 * 1024 * 1024)


def dense_forward(x, weight, bias, *, compute_dtype=None, tm=None, tn=None, tk=None):
    """y = x @ weight.T + bias.  x: [B, K], weight: [N, K], bias: [N]."""
    B, K = x.shape
    N, K2 = weight.shape
    assert K == K2, "weight/input feature mismatch"
    assert bias.shape == (N,), "bias shape mismatch"

    cdt = jnp.dtype(compute_dtype) if compute_dtype is not None else jnp.dtype(x.dtype)
    itemsize = cdt.itemsize
    out_itemsize = jnp.dtype(x.dtype).itemsize
    # Sublane packing: second-minor tile dim multiple of 8 (f32) / 16 (bf16) / 32 (i8).
    sub = max(8, 32 // itemsize)

    # Tile selection: lane-dense (tn/tk multiples of 128 -> unmasked vst and
    # full-width MXU passes), biggest tiles under the VMEM budget.  Larger tm
    # cuts W re-streaming (W HBM traffic scales with ceil(B/tm)); larger tk
    # cuts per-grid-step overhead and accumulator read-modify-write traffic.
    tn_user = tn is not None
    if tm is None:
        tm = min(512, _round_up(B, sub))
    if tn is None:
        tn = min(512, _round_up(N, 128))
    if tk is None:
        tk = min(1024, _round_up(K, 128))

    # Megacore: v7x has 2 TensorCores sharded over the parallel grid axes.  If
    # both would collapse to one block, split N in two (no-op on v5e/v6e).
    if not tn_user and pl.cdiv(B, tm) == 1 and pl.cdiv(N, tn) == 1 and N > 128:
        tn = max(128, _round_up((N + 1) // 2, 128))

    budget = _vmem_budget_bytes()

    def footprint(tm_, tn_, tk_):
        xb = 2 * tm_ * tk_ * itemsize            # double-buffered x tiles
        wb = 2 * tn_ * tk_ * itemsize            # double-buffered W tiles
        ob = 2 * tm_ * tn_ * out_itemsize        # double-buffered out tiles
        ab = 0 if out_itemsize == 4 else tm_ * tn_ * 4   # f32 acc scratch
        bb = 2 * tn_ * 4                         # bias tiles
        return xb + wb + ob + ab + bb

    # Shrink K first (only adds grid steps), then M, to stay inside the budget.
    while footprint(tm, tn, tk) > budget and tk > 128:
        tk = max(128, _round_up(tk // 2, 128))
    while footprint(tm, tn, tk) > budget and tm > sub:
        tm = max(sub, _round_up(tm // 2, sub))

    return _dense_pallas(
        x, weight, bias,
        tm=tm, tn=tn, tk=tk,
        compute_dtype=None if compute_dtype is None else cdt.name,
        vmem_limit=budget,
    )


if __name__ == "__main__":
    # Small shapes consistent with the module: batch=8 tokens, hidden 32 -> 64.
    batch, input_dim, output_dim = 8, 32, 64

    key = jax.random.PRNGKey(0)
    kx, kw, kb = jax.random.split(key, 3)

    x = jax.random.normal(kx, (batch, input_dim), dtype=jnp.float32)
    bound = 1.0 / (input_dim ** 0.5)
    weight = jax.random.uniform(
        kw, (output_dim, input_dim), dtype=jnp.float32, minval=-bound, maxval=bound
    )
    bias = jax.random.uniform(
        kb, (output_dim,), dtype=jnp.float32, minval=-bound, maxval=bound
    )

    # f32 path (default).
    y = dense_forward(x, weight, bias)
    jax.block_until_ready(y)
    y_ref = x @ weight.T + bias
    assert y.shape == (batch, output_dim)
    assert jnp.allclose(y, y_ref, atol=2e-4, rtol=2e-4), "f32 path mismatch"

    # bf16 operand path (throughput mode): f32 in/out, bf16 MXU operands.
    y_bf = dense_forward(x, weight, bias, compute_dtype=jnp.bfloat16)
    jax.block_until_ready(y_bf)
    assert y_bf.dtype == jnp.float32
    assert jnp.allclose(y_bf, y_ref, atol=3e-2, rtol=3e-2), "bf16 path mismatch"

    # Non-tile-multiple, multi-tile shapes: exercises OOB-masked M/N edge
    # blocks (no wrapper padding) and the in-kernel K-edge masking.
    B2, K2_, N2 = 200, 300, 260
    x2 = jax.random.normal(jax.random.PRNGKey(1), (B2, K2_), dtype=jnp.float32)
    w2 = jax.random.normal(jax.random.PRNGKey(2), (N2, K2_), dtype=jnp.float32) * 0.05
    b2 = jax.random.normal(jax.random.PRNGKey(3), (N2,), dtype=jnp.float32)
    y2 = dense_forward(x2, w2, b2)
    jax.block_until_ready(y2)
    y2_ref = x2 @ w2.T + b2
    assert jnp.allclose(y2, y2_ref, atol=2e-3, rtol=2e-3), "edge-block path mismatch"

    # Tile-multiple shape on the bf16 path with a multi-step K reduction.
    B3, K3, N3 = 256, 512, 512
    x3 = jax.random.normal(jax.random.PRNGKey(4), (B3, K3), dtype=jnp.float32)
    w3 = jax.random.normal(jax.random.PRNGKey(5), (N3, K3), dtype=jnp.float32) * 0.03
    b3 = jax.random.normal(jax.random.PRNGKey(6), (N3,), dtype=jnp.float32)
    y3 = dense_forward(x3, w3, b3, compute_dtype=jnp.bfloat16, tk=256)
    jax.block_until_ready(y3)
    y3_ref = (x3.astype(jnp.bfloat16).astype(jnp.float32)
              @ w3.astype(jnp.bfloat16).astype(jnp.float32).T + b3)
    assert jnp.allclose(y3, y3_ref, atol=5e-2, rtol=5e-2), "bf16 multi-K mismatch"

    print("KERNEL_OK")
</pallas_src>

<mosaic_0001>
module attributes {stable_mosaic.version = 11 : i64} {
  func.func @_dense_kernel(%arg0: i32, %arg1: i32, %arg2: i32, %arg3: memref<8x128xf32, #tpu.memory_space<vmem>>, %arg4: memref<128x128xf32, #tpu.memory_space<vmem>>, %arg5: memref<1x128xf32, #tpu.memory_space<vmem>>, %arg6: memref<8x128xf32, #tpu.memory_space<vmem>>) attributes {dimension_semantics = [#tpu.dimension_semantics<parallel>, #tpu.dimension_semantics<parallel>, #tpu.dimension_semantics<arbitrary>], iteration_bounds = array<i64: 1, 1, 1>, scalar_prefetch = 0 : i64, scratch_operands = 0 : i64, tpu.core_type = #tpu.core_type<tc>, window_params = [{transform_indices = @transform_0, window_bounds = array<i64: 8, 128>}, {transform_indices = @transform_1, window_bounds = array<i64: 128, 128>}, {transform_indices = @transform_2, window_bounds = array<i64: 1, 128>}, {transform_indices = @transform_3, window_bounds = array<i64: 8, 128>}]} {
    %c0_i32 = arith.constant 0 : i32
    %0 = arith.cmpi eq, %arg2, %c0_i32 : i32
    %1 = arith.extui %0 : i1 to i32
    %c0_i32_0 = arith.constant 0 : i32
    %2 = arith.cmpi ne, %1, %c0_i32_0 : i32
    scf.if %2 {
      %c0_11 = arith.constant 0 : index
      %c0_12 = arith.constant 0 : index
      %21 = vector.load %arg5[%c0_11, %c0_12] : memref<1x128xf32, #tpu.memory_space<vmem>>, vector<1x128xf32>
      %22 = vector.shape_cast %21 : vector<1x128xf32> to vector<1x128xf32>
      %23 = vector.broadcast %22 : vector<1x128xf32> to vector<8x128xf32>
      %c0_13 = arith.constant 0 : index
      %c0_14 = arith.constant 0 : index
      %24 = vector.load %arg6[%c0_13, %c0_14] : memref<8x128xf32, #tpu.memory_space<vmem>>, vector<8x128xf32>
      tpu.vector_store %arg6[%c0_13, %c0_14], %23 {strides = array<i32>} : memref<8x128xf32, #tpu.memory_space<vmem>>, vector<8x128xf32>,
    } else {
    }
    %c0 = arith.constant 0 : index
    %c0_1 = arith.constant 0 : index
    %3 = vector.load %arg3[%c0, %c0_1] : memref<8x128xf32, #tpu.memory_space<vmem>>, vector<8x128xf32>
    %c0_2 = arith.constant 0 : index
    %c0_3 = arith.constant 0 : index
    %4 = vector.load %arg4[%c0_2, %c0_3] : memref<128x128xf32, #tpu.memory_space<vmem>>, vector<128x128xf32>
    %c0_i32_4 = arith.constant 0 : i32
    %5 = arith.cmpi eq, %arg2, %c0_i32_4 : i32
    %c32_i32 = arith.constant 32 : i32
    %c128_i32 = arith.constant 128 : i32
    %6 = arith.select %5, %c32_i32, %c128_i32 : i32
    %7 = tpu.iota {dimensions = array<i32: 1>} : vector<8x128xi32>
    %8 = vector.broadcast %6 : i32 to vector<8x128xi32>
    %9 = arith.cmpi slt, %7, %8 : vector<8x128xi32>
    %cst = arith.constant 0.000000e+00 : f32
    %10 = vector.broadcast %cst : f32 to vector<8x128xf32>
    %11 = arith.select %9, %3, %10 : vector<8x128xi1>, vector<8x128xf32>
    %12 = tpu.iota {dimensions = array<i32: 1>} : vector<128x128xi32>
    %13 = vector.broadcast %6 : i32 to vector<128x128xi32>
    %14 = arith.cmpi slt, %12, %13 : vector<128x128xi32>
    %cst_5 = arith.constant 0.000000e+00 : f32
    %15 = vector.broadcast %cst_5 : f32 to vector<128x128xf32>
    %16 = arith.select %14, %4, %15 : vector<128x128xi1>, vector<128x128xf32>
    %c0_6 = arith.constant 0 : index
    %c0_7 = arith.constant 0 : index
    %17 = vector.load %arg6[%c0_6, %c0_7] : memref<8x128xf32, #tpu.memory_space<vmem>>, vector<8x128xf32>
    %cst_8 = arith.constant dense<0.000000e+00> : vector<8x128xf32>
    %18 = tpu.matmul %11, %16, %cst_8 {dimension_numbers = #tpu.dot_dimension_numbers<[1], [1], [0], [0], [0, 0, 1, 0], [], []>} : vector<8x128xf32>, vector<128x128xf32>, vector<8x128xf32> -> vector<8x128xf32>
    %19 = arith.addf %17, %18 : vector<8x128xf32>
    %c0_9 = arith.constant 0 : index
    %c0_10 = arith.constant 0 : index
    %20 = vector.load %arg6[%c0_9, %c0_10] : memref<8x128xf32, #tpu.memory_space<vmem>>, vector<8x128xf32>
    tpu.vector_store %arg6[%c0_9, %c0_10], %19 {strides = array<i32>} : memref<8x128xf32, #tpu.memory_space<vmem>>, vector<8x128xf32>,
    return
  }
  func.func @transform_0(%arg0: i32, %arg1: i32, %arg2: i32) -> (i32, i32) {
    %c0_i32 = arith.constant 0 : i32
    return %arg0, %arg2 : i32, i32
  }
  func.func @transform_1(%arg0: i32, %arg1: i32, %arg2: i32) -> (i32, i32) {
    %c0_i32 = arith.constant 0 : i32
    return %arg1, %arg2 : i32, i32
  }
  func.func @transform_2(%arg0: i32, %arg1: i32, %arg2: i32) -> (i32, i32) {
    %c0_i32 = arith.constant 0 : i32
    %c0_i32_0 = arith.constant 0 : i32
    return %c0_i32, %arg1 : i32, i32
  }
  func.func @transform_3(%arg0: i32, %arg1: i32, %arg2: i32) -> (i32, i32) {
    %c0_i32 = arith.constant 0 : i32
    return %arg0, %arg1 : i32, i32
  }
}

</mosaic_0001>

<bundles_post_ra>
// kernel: _dense_pallas.1
= control target key start
LH: loop header
LB: loop body
LE: loop exit
PB: predicated region body
PF: predicated region fallthrough
CT: control target
= control target key end

     0   :  { %v45_v2 = vlaneseq  ;;  %v283_v3 = vmov 0.0|0.0   ;;  %vm284_vm0 = vmmov 0   ;;  %v285_v4 = vmov 0.0   ;;  %s396_s0 = inlined_call_operand.vmem [shape: f32[8,32], index: 0, kind: input, shape index: {}]   ;;  %s397_s1 = inlined_call_operand.vmem [shape: f32[64,32], index: 1, kind: input, shape index: {}]   ;;  %s398_s2 = inlined_call_operand.vmem [shape: f32[1,64], index: 2, kind: input, shape index: {}]   ;;  %s399_s3 = inlined_call_operand.hbm [shape: f32[8,64], index: 3, kind: output, shape index: {}]  }
   0x1   :  { %v28_v0 = vld [vmem:[%s397_s1] sm:$0xff]  ;;  %v29_v1 = vld [vmem:[%s397_s1 + $0x8] sm:$0xff]  ;;  %223 = vmatprep.subr.bf16.mxu0 %v283_v3  ;;  %220 = vmatprep.mubr.msk.f32.mxu0 %vm284_vm0, %v285_v4 }
   0x2   :  { %v46_v5 = vand.u32 127, %v45_v2  ;;  %v224_v6 = vpack.c.bf16 %v29_v1, %v28_v0 }
   0x4   :  { %vm48_vm1 = vcmp.lt.s32.totalorder %v46_v5, 32 }
   0x5   :  { %vm315_vm2 = vmpackc.low %vm48_vm1, %vm48_vm1 }
   0x6   :  { %226 = vmatpush3.bf16.xpose.msk.msra.mxu0 %vm315_vm2, %v224_v6 }
   0x7   :  { %8 = vsyncpa [#allocation3], 0  ;;  %227 = vmatprep.subr.bf16.mxu0 %v283_v3  ;;  %v30_v8 = vld [vmem:[%s397_s1 + $0x10] sm:$0xff]  ;;  %v31_v9 = vld [vmem:[%s397_s1 + $0x18] sm:$0xff]  ;;  %s286_s21 = smov [#allocation2]  }
   0x8   :  { %v228_v10 = vpack.c.bf16 %v31_v9, %v30_v8  ;;  %v32_v11 = vld [vmem:[%s397_s1 + $0x20] sm:$0xff]  ;;  %v33_v12 = vld [vmem:[%s397_s1 + $0x28] sm:$0xff]  ;;  %v34_v14 = vld [vmem:[%s397_s1 + $0x30] sm:$0xff]  ;;  %s145_s22 = sshll.u32 %s286_s21, 4  ;;  %s146_s22 = int_to_ptr.vmem [resolvable:$true] %s145_s22 }
   0x9   :  { %v232_v13 = vpack.c.bf16 %v33_v12, %v32_v11  ;;  %v35_v15 = vld [vmem:[%s397_s1 + $0x38] sm:$0xff]  ;;  %v36_v17 = vld [vmem:[%s397_s1 + $0x40] sm:$0xff]  ;;  %v37_v18 = vld [vmem:[%s397_s1 + $0x48] sm:$0xff]  ;;  %p264_p1 = scmp.lt.s32.totalorder %s146_s22, %s146_s22 }
   0xa   :  { %v236_v16 = vpack.c.bf16 %v35_v15, %v34_v14  ;;  %v240_v19 = vpack.c.bf16 %v37_v18, %v36_v17  ;;  %v38_v20 = vld [vmem:[%s397_s1 + $0x50] sm:$0xff]  ;;  %v39_v21 = vld [vmem:[%s397_s1 + $0x58] sm:$0xff]  ;;  %v40_v23 = vld [vmem:[%s397_s1 + $0x60] sm:$0xff] }
   0xb   :  { %v244_v22 = vpack.c.bf16 %v39_v21, %v38_v20  ;;  %v41_v24 = vld [vmem:[%s397_s1 + $0x68] sm:$0xff]  ;;  %v42_v26 = vld [vmem:[%s397_s1 + $0x70] sm:$0xff]  ;;  %v43_v27 = vld [vmem:[%s397_s1 + $0x78] sm:$0xff]  ;;  %s259_s1 = scalar_lea.vmem %s146_s22, 128 }
   0xc   :  { %v248_v25 = vpack.c.bf16 %v41_v24, %v40_v23  ;;  %v252_v28 = vpack.c.bf16 %v43_v27, %v42_v26  ;;  %v27_v29 = vld [vmem:[%s396_s0] sm:$0xff]  ;;  %p260_p0 = scmp.ne.s32.totalorder %s146_s22, %s259_s1  ;;  %p265_p2 = scmp.lt.s32.totalorder %s259_s1, %s259_s1 }
   0xd   :  { %v153_v30 = vld [vmem:[%s398_s2] ss:$0 sm:$0xff] }
   0xe   :  { %230 = vmatpush3.bf16.xpose.msk.msra.mxu0 %vm315_vm2, %v228_v10  ;;  %p266_p3 = por %p265_p2, %p264_p1 }
   0xf   :  { %231 = vmatprep.subr.bf16.mxu0 %v283_v3 }
  0x10   :  { %p267_p4 = pnand %p266_p3, %p260_p0 }
  0x16   :  { %234 = vmatpush3.bf16.xpose.msk.msra.mxu0 %vm315_vm2, %v232_v13 }
  0x17   :  { %235 = vmatprep.subr.bf16.mxu0 %v283_v3 }
  0x1e   :  { %238 = vmatpush3.bf16.xpose.msk.msra.mxu0 %vm315_vm2, %v236_v16 }
  0x1f   :  { %239 = vmatprep.subr.bf16.mxu0 %v283_v3 }
  0x26   :  { %242 = vmatpush3.bf16.xpose.msk.msra.mxu0 %vm315_vm2, %v240_v19 }
  0x27   :  { %243 = vmatprep.subr.bf16.mxu0 %v283_v3 }
  0x2e   :  { %246 = vmatpush3.bf16.xpose.msk.msra.mxu0 %vm315_vm2, %v244_v22 }
  0x2f   :  { %247 = vmatprep.subr.bf16.mxu0 %v283_v3 }
  0x36   :  { %250 = vmatpush3.bf16.xpose.msk.msra.mxu0 %vm315_vm2, %v248_v25 }
  0x37   :  { %251 = vmatprep.subr.bf16.mxu0 %v283_v3 }
  0x3e   :  { %254 = vmatpush3.bf16.xpose.msk.msra.mxu0 %vm315_vm2, %v252_v28 }
  0x45   :  { %221 = vmatmul.mubr.msk.f32.vlgmr.msra.gmra.mrb[0].mxu0 %vm48_vm1, %v27_v29 }
 0x118   :  { %v133_v31 = vpop.f32.mrb[0].mxu0 }
 0x119   :  { %v137_v32 = vadd.f32 %v153_v30, %v133_v31  ;;  %v222_v33 = vpop.f32.mrb[1].mxu0 }
 0x11b   :  { %138 = vst [vmem:[#allocation2] sm:$0xff] %v137_v32 }
 0x11c   :  { %270 = shalt.err (!%p267_p4)
}
 0x11d   :  { %s271_s24 = scalar_lea.hbm %s399_s3, 128 }
 0x11e   :  { %p272_p5 = scmp.ne.s32.totalorder %s399_s3, %s271_s24  ;;  %p275_p6 = scmp.lt.u32.totalorder %s271_s24, %s399_s3 }
 0x120   :  { %p277_p7 = pnand %p275_p6, %p272_p5 }
 0x122   :  { %280 = shalt.err (!%p277_p7)
}
 0x123   :  { %148 = dma.vmem_to_hbm [thread:$0]  %s146_s22, 128, %s399_s3, [#allocation3]  }
 0x124   :  { %281 = dma.done.wait [#allocation3], 128  }
 0x125   :  { %282 = vsyncadd [#allocation3], 4294967168 }
 0x126   :  { %152 = vsyncpa [#allocation3], 1 }

</bundles_post_ra>
